<compile_context>
chip_gen: v5e
topology: v5e:2x2
jax: 0.10.0
libtpu: 0.0.40
codegen_flags: <defaults>
</compile_context>

<pallas_src>
import functools

import jax
import jax.numpy as jnp
from jax import lax
from jax.experimental import pallas as pl
from jax.experimental.pallas import tpu as pltpu

_MIB = 1024 * 1024


def _cpr_kernel(x_ref, o_ref, *, s_total, tile_r, tiles_per_split, needs_mask):
    p = pl.program_id(1)
    t = pl.program_id(2)

    # Output block is resident across the row-tile (reduction) axis.
    @pl.when(t == 0)
    def _():
        o_ref[...] = jnp.zeros_like(o_ref)

    x = x_ref[...].astype(jnp.float32)                # (tile_n, C, tile_r, 128)

    # Numerically stable fused entropy over the channel axis (axis 1).
    m = jnp.max(x, axis=1, keepdims=True)             # (tile_n, 1, tile_r, 128)
    xs = x - m
    e = jnp.exp(xs)                                   # single EUP pass
    denom = jnp.sum(e, axis=1, keepdims=True)
    num = jnp.sum(e * xs, axis=1, keepdims=True)
    ent = jnp.log(denom) - num / denom                # per-pixel entropy

    # Mask pixels present only due to padding / tile overhang / split overlap.
    if needs_mask:
        row = lax.broadcasted_iota(jnp.int32, (tile_r, 128), 0)
        lane = lax.broadcasted_iota(jnp.int32, (tile_r, 128), 1)
        row_start = (p * tiles_per_split + t) * tile_r
        gpix = (row_start + row) * 128 + lane
        ent = jnp.where((gpix < s_total)[None, None], ent, 0.0)

    # Fold to one lane-dense vreg row (leading-dim adds + one sublane reduce,
    # no relayout) and accumulate into the resident 512 B output block.
    part = jnp.sum(ent, axis=(0, 1))                  # (tile_r, 128)
    fold = jnp.sum(part, axis=0, keepdims=True)       # (1, 128)
    o_ref[...] += fold.reshape(1, 1, 1, 128)


def _round_up(a, b):
    return (a + b - 1) // b * b


def _ceil_div(a, b):
    return (a + b - 1) // b


def _sublane_pack(itemsize):
    # Sub-32-bit dtypes pack along sublanes: (8,128) f32, (16,128) bf16, (32,128) i8.
    return max(8, 32 // max(int(itemsize), 1))


def _vmem_capacity_bytes():
    try:
        info = pltpu.get_tpu_info()
        cap = getattr(info, "vmem_capacity_bytes", None)
        if cap:
            return int(cap)
    except Exception:
        pass
    return 64 * _MIB          # conservative: v7x per-TensorCore VMEM


def _choose_tiles(n, c, r, itemsize, target_bytes):
    """Pick (tile_n, tile_r) for a (tile_n, C, tile_r, 128) input block.

    Accounts for sublane padding of the row axis, keeps every contiguous DMA
    run >= pack*128*itemsize (>= 4 KiB), and folds whole batch items per step
    (tile_n always divides N, so the batch axis never needs masking).
    """
    pack = _sublane_pack(itemsize)
    row_bytes = c * 128 * itemsize                    # one 128-pixel row across C
    item_bytes = _round_up(r, pack) * row_bytes       # one batch item (padded)

    if item_bytes <= target_bytes:
        budget = max(1, target_bytes // item_bytes)
        tile_n = 1
        for d in range(min(n, budget), 0, -1):
            if n % d == 0:
                tile_n = d
                break
        return tile_n, r

    # One item's spatial data alone exceeds the target: tile the row axis.
    tile_r = max(pack, (target_bytes // row_bytes) // pack * pack)
    tile_r = min(tile_r, r)
    if tile_r != r and tile_r % pack != 0:            # belt-and-suspenders
        tile_r = max(pack, (tile_r // pack) * pack)
    return 1, tile_r


def cpr_forward(x, *, target_block_bytes=None):
    """x: (N, C, H, W) array -> scalar float32 mean channel entropy."""
    n, c, h, w = x.shape
    s = h * w
    itemsize = jnp.dtype(x.dtype).itemsize

    # Spatial axis as (rows, 128 lanes).  Pad only when S % 128 != 0 (rare);
    # padded pixels are masked out in-kernel.
    s_pad = _round_up(s, 128)
    xr = x.reshape(n, c, s)
    if s_pad != s:
        xr = jnp.pad(xr, ((0, 0), (0, 0), (0, s_pad - s)))
    r = s_pad // 128
    x4 = xr.reshape(n, c, r, 128)

    cap = _vmem_capacity_bytes()
    if target_block_bytes is None:
        target_block_bytes = min(8 * _MIB, max(cap // 6, 2 * _MIB))
    tile_n, tile_r = _choose_tiles(n, c, r, itemsize, target_block_bytes)

    pack = _sublane_pack(itemsize)
    groups = n // tile_n
    num_t = _ceil_div(r, tile_r)

    # v7x megacore: when the batch axis collapses to one group, split the
    # row-tile axis so the second TensorCore has work (no-op on v5e/v6e: 1 TC).
    if groups == 1 and num_t >= 2:
        n_split = 2
        tiles_per_split = _ceil_div(num_t, n_split)
    else:
        n_split = 1
        tiles_per_split = num_t

    needs_mask = n_split * tiles_per_split * tile_r * 128 != s

    if n_split == 1:
        in_idx = lambda g, p, t: (g, 0, t, 0)
    else:
        # Clamp duplicated tiles of an odd split; their pixels are masked to
        # zero in the kernel, so nothing is double counted.
        in_idx = lambda g, p, t: (
            g, 0, jnp.minimum(p * tiles_per_split + t, num_t - 1), 0)

    in_block_bytes = tile_n * c * _round_up(tile_r, pack) * 128 * itemsize
    vmem_limit = int(min(cap, max(32 * _MIB, 2 * in_block_bytes + 4 * _MIB)))

    kernel = functools.partial(
        _cpr_kernel, s_total=s, tile_r=tile_r,
        tiles_per_split=tiles_per_split, needs_mask=needs_mask)

    cost = pl.CostEstimate(
        flops=int(7 * n * c * s),
        transcendentals=int(n * c * s + n * s),
        bytes_accessed=int(n * c * s * itemsize + groups * n_split * 128 * 4))

    partials = pl.pallas_call(
        kernel,
        out_shape=jax.ShapeDtypeStruct((groups, n_split, 1, 128), jnp.float32),
        grid_spec=pltpu.PrefetchScalarGridSpec(
            num_scalar_prefetch=0,
            grid=(groups, n_split, tiles_per_split),
            in_specs=[pl.BlockSpec((tile_n, c, tile_r, 128), in_idx)],
            out_specs=pl.BlockSpec((1, 1, 1, 128), lambda g, p, t: (g, p, 0, 0)),
        ),
        compiler_params=pltpu.CompilerParams(
            dimension_semantics=("parallel", "parallel", "arbitrary"),
            vmem_limit_bytes=vmem_limit),
        cost_estimate=cost,
    )(x4)

    # Tiny final collapse: <= groups * n_split * 128 float32 partials.
    return jnp.sum(partials) / jnp.float32(n * s)


def cpr_reference(x):
    xf = x.astype(jnp.float32)
    p = jax.nn.softmax(xf, axis=1)
    logp = jax.nn.log_softmax(xf, axis=1)
    b = -(p * logp).sum(axis=1)
    return b.mean()


if __name__ == "__main__":
    key = jax.random.PRNGKey(0)

    # Required smoke test.
    x = jax.random.normal(key, (2, 4, 16, 16), dtype=jnp.float32)
    out = jax.block_until_ready(cpr_forward(x))
    ref = cpr_reference(x)
    assert jnp.allclose(out, ref, atol=1e-5, rtol=1e-5), (out, ref)

    # Odd channel count + H*W not a multiple of 128 (exercises pad + mask).
    k1, k2 = jax.random.split(key)
    x2 = jax.random.normal(k1, (3, 5, 9, 9), dtype=jnp.float32)
    out2 = jax.block_until_ready(cpr_forward(x2))
    ref2 = cpr_reference(x2)
    assert jnp.allclose(out2, ref2, atol=1e-5, rtol=1e-5), (out2, ref2)

    # bf16 input path.
    x3 = jax.random.normal(k2, (2, 3, 10, 13), dtype=jnp.bfloat16)
    out3 = jax.block_until_ready(cpr_forward(x3))
    ref3 = cpr_reference(x3)
    assert jnp.allclose(out3, ref3, atol=1e-4, rtol=1e-4), (out3, ref3)

    print("KERNEL_OK")
</pallas_src>

<mosaic_0001>
module attributes {stable_mosaic.version = 11 : i64} {
  func.func @_cpr_kernel(%arg0: i32, %arg1: i32, %arg2: i32, %arg3: memref<2x4x2x128xf32, #tpu.memory_space<vmem>>, %arg4: memref<1x1x1x128xf32, #tpu.memory_space<vmem>>) attributes {dimension_semantics = [#tpu.dimension_semantics<parallel>, #tpu.dimension_semantics<parallel>, #tpu.dimension_semantics<arbitrary>], iteration_bounds = array<i64: 1, 1, 1>, scalar_prefetch = 0 : i64, scratch_operands = 0 : i64, tpu.core_type = #tpu.core_type<tc>, window_params = [{transform_indices = @transform_0, window_bounds = array<i64: 2, 4, 2, 128>}, {transform_indices = @transform_1, window_bounds = array<i64: 1, 1, 1, 128>}]} {
    %c0_i32 = arith.constant 0 : i32
    %0 = arith.cmpi eq, %arg2, %c0_i32 : i32
    %1 = arith.extui %0 : i1 to i32
    %c0_i32_0 = arith.constant 0 : i32
    %2 = arith.cmpi ne, %1, %c0_i32_0 : i32
    scf.if %2 {
      %cst_16 = arith.constant 0.000000e+00 : f32
      %24 = vector.broadcast %cst_16 : f32 to vector<1x1x1x128xf32>
      %c0_17 = arith.constant 0 : index
      %c0_18 = arith.constant 0 : index
      %c0_19 = arith.constant 0 : index
      %c0_20 = arith.constant 0 : index
      %25 = vector.load %arg4[%c0_17, %c0_18, %c0_19, %c0_20] : memref<1x1x1x128xf32, #tpu.memory_space<vmem>>, vector<1x1x1x128xf32>
      tpu.vector_store %arg4[%c0_17, %c0_18, %c0_19, %c0_20], %24 {strides = array<i32>} : memref<1x1x1x128xf32, #tpu.memory_space<vmem>>, vector<1x1x1x128xf32>,
    } else {
    }
    %c0 = arith.constant 0 : index
    %c0_1 = arith.constant 0 : index
    %c0_2 = arith.constant 0 : index
    %c0_3 = arith.constant 0 : index
    %3 = vector.load %arg3[%c0, %c0_1, %c0_2, %c0_3] : memref<2x4x2x128xf32, #tpu.memory_space<vmem>>, vector<2x4x2x128xf32>
    %cst = arith.constant dense<0xFF800000> : vector<2x2x128xf32>
    %4 = vector.multi_reduction <maximumf>, %3, %cst [1] : vector<2x4x2x128xf32> to vector<2x2x128xf32>
    %5 = vector.shape_cast %4 : vector<2x2x128xf32> to vector<2x1x2x128xf32>
    %6 = vector.broadcast %5 : vector<2x1x2x128xf32> to vector<2x4x2x128xf32>
    %7 = arith.subf %3, %6 : vector<2x4x2x128xf32>
    %8 = math.exp %7 : vector<2x4x2x128xf32>
    %cst_4 = arith.constant dense<0.000000e+00> : vector<2x2x128xf32>
    %9 = vector.multi_reduction <add>, %8, %cst_4 [1] : vector<2x4x2x128xf32> to vector<2x2x128xf32>
    %10 = vector.shape_cast %9 : vector<2x2x128xf32> to vector<2x1x2x128xf32>
    %11 = arith.mulf %8, %7 : vector<2x4x2x128xf32>
    %cst_5 = arith.constant dense<0.000000e+00> : vector<2x2x128xf32>
    %12 = vector.multi_reduction <add>, %11, %cst_5 [1] : vector<2x4x2x128xf32> to vector<2x2x128xf32>
    %13 = vector.shape_cast %12 : vector<2x2x128xf32> to vector<2x1x2x128xf32>
    %14 = math.log %10 : vector<2x1x2x128xf32>
    %15 = arith.divf %13, %10 : vector<2x1x2x128xf32>
    %16 = arith.subf %14, %15 : vector<2x1x2x128xf32>
    %cst_6 = arith.constant dense<0.000000e+00> : vector<2x128xf32>
    %17 = vector.multi_reduction <add>, %16, %cst_6 [0, 1] : vector<2x1x2x128xf32> to vector<2x128xf32>
    %cst_7 = arith.constant dense<0.000000e+00> : vector<128xf32>
    %18 = vector.multi_reduction <add>, %17, %cst_7 [0] : vector<2x128xf32> to vector<128xf32>
    %19 = vector.shape_cast %18 : vector<128xf32> to vector<1x128xf32>
    %c0_8 = arith.constant 0 : index
    %c0_9 = arith.constant 0 : index
    %c0_10 = arith.constant 0 : index
    %c0_11 = arith.constant 0 : index
    %20 = vector.load %arg4[%c0_8, %c0_9, %c0_10, %c0_11] : memref<1x1x1x128xf32, #tpu.memory_space<vmem>>, vector<1x1x1x128xf32>
    %21 = vector.shape_cast %19 : vector<1x128xf32> to vector<1x1x1x128xf32>
    %22 = arith.addf %20, %21 : vector<1x1x1x128xf32>
    %c0_12 = arith.constant 0 : index
    %c0_13 = arith.constant 0 : index
    %c0_14 = arith.constant 0 : index
    %c0_15 = arith.constant 0 : index
    %23 = vector.load %arg4[%c0_12, %c0_13, %c0_14, %c0_15] : memref<1x1x1x128xf32, #tpu.memory_space<vmem>>, vector<1x1x1x128xf32>
    tpu.vector_store %arg4[%c0_12, %c0_13, %c0_14, %c0_15], %22 {strides = array<i32>} : memref<1x1x1x128xf32, #tpu.memory_space<vmem>>, vector<1x1x1x128xf32>,
    return
  }
  func.func @transform_0(%arg0: i32, %arg1: i32, %arg2: i32) -> (i32, i32, i32, i32) {
    %c0_i32 = arith.constant 0 : i32
    %c0_i32_0 = arith.constant 0 : i32
    %c0_i32_1 = arith.constant 0 : i32
    return %arg0, %c0_i32, %arg2, %c0_i32_0 : i32, i32, i32, i32
  }
  func.func @transform_1(%arg0: i32, %arg1: i32, %arg2: i32) -> (i32, i32, i32, i32) {
    %c0_i32 = arith.constant 0 : i32
    %c0_i32_0 = arith.constant 0 : i32
    %c0_i32_1 = arith.constant 0 : i32
    return %arg0, %arg1, %c0_i32, %c0_i32_0 : i32, i32, i32, i32
  }
}

</mosaic_0001>

<bundles_post_ra>
// kernel: tpu_custom_call.1
= control target key start
LH: loop header
LB: loop body
LE: loop exit
PB: predicated region body
PF: predicated region fallthrough
CT: control target
= control target key end

     0   :  { %6 = vsyncpa [#allocation3], 0  ;;  %s312_s0 = inlined_call_operand.hbm [shape: f32[2,4,2,128], index: 0, kind: input, shape index: {}]   ;;  %s313_s1 = inlined_call_operand.hbm [shape: f32[1,1,1,128], index: 1, kind: output, shape index: {}]  }
   0x1   :  { %7 = vsyncpa [#allocation4], 0  ;;  %s12_s8 = sshll.u32 %s312_s0, 4  ;;  %s260_s9 = smov [#allocation2]   ;;  %s13_s8 = int_to_ptr.hbm [resolvable:$true] %s12_s8 }
   0x2   :  { %s14_s10 = sshll.u32 %s260_s9, 4  ;;  %s261_s11 = smov 32   ;;  %s15_s10 = int_to_ptr.vmem [resolvable:$true] %s14_s10 }
   0x3   :  { %s262_s12 = smov 2  }
   0x4   :  { %20 = dma.hbm_to_vmem [thread:$0]  %s13_s8, 256, %s15_s10, [#allocation3], %s261_s11, %s261_s11, %s262_s12  }
   0x5   :  { %256 = dma.done.wait [#allocation3], 256  }
   0x6   :  { %257 = vsyncadd [#allocation3], 4294967040  ;;  %v263_v0 = vmov 0.0   ;;  %vm38_vm0 = vcmask 1041408   ;;  %v30_v1 = vld [vmem:[#allocation2] sm:$0x3] }
   0x7   :  { %29 = vst [vmem:[#allocation5] sm:$0x1] %v263_v0  ;;  %v31_v2 = vld [vmem:[#allocation2 + $0x2] sm:$0x3]  ;;  %v32_v3 = vld [vmem:[#allocation2 + $0x4] sm:$0x3] }
   0x8   :  { %v33_v4 = vld [vmem:[#allocation2 + $0x6] sm:$0x3]  ;;  %v34_v5 = vld [vmem:[#allocation2 + $0x8] sm:$0x3]  ;;  %v35_v6 = vld [vmem:[#allocation2 + $0xa] sm:$0x3] }
   0x9   :  { %v36_v7 = vld [vmem:[#allocation2 + $0xc] sm:$0x3]  ;;  %v37_v8 = vld [vmem:[#allocation2 + $0xe] sm:$0x3]  ;;  %v39_v9 = vsel %vm38_vm0, %v30_v1, -inf  ;;  %v40_v10 = vsel %vm38_vm0, %v31_v2, -inf }
   0xa   :  { %v41_v11 = vsel %vm38_vm0, %v32_v3, -inf  ;;  %v43_v12 = vsel %vm38_vm0, %v33_v4, -inf  ;;  %v46_v13 = vsel %vm38_vm0, %v34_v5, -inf  ;;  %v47_v14 = vsel %vm38_vm0, %v35_v6, -inf  ;;  %s264_s0 = smov [#allocation5]   ;;  %s169_s16 = sshll.u32 %s313_s1, 4  ;;  %s170_s16 = int_to_ptr.hbm [resolvable:$true] %s169_s16 }
   0xb   :  { %v42_v15 = vmax.f32 %v39_v9, %v41_v11  ;;  %v44_v16 = vmax.f32 %v40_v10, %v43_v12  ;;  %v48_v17 = vsel %vm38_vm0, %v36_v7, -inf  ;;  %v50_v18 = vsel %vm38_vm0, %v37_v8, -inf  ;;  %s167_s13 = sshll.u32 %s264_s0, 4  ;;  %s168_s13 = int_to_ptr.vmem [resolvable:$true] %s167_s13 }
   0xc   :  { %v49_v19 = vmax.f32 %v46_v13, %v48_v17  ;;  %v51_v20 = vmax.f32 %v47_v14, %v50_v18 }
   0xd   :  { %v45_v21 = vmax.f32 %v42_v15, %v44_v16 }
   0xe   :  { %v52_v22 = vmax.f32 %v49_v19, %v51_v20 }
   0xf   :  { %v53_v23 = vsub.f32 %v30_v1, %v45_v21  ;;  %v54_v24 = vsub.f32 %v31_v2, %v45_v21  ;;  %v55_v25 = vsub.f32 %v32_v3, %v45_v21  ;;  %v56_v26 = vsub.f32 %v33_v4, %v45_v21 }
  0x10   :  { %v57_v27 = vsub.f32 %v34_v5, %v52_v22  ;;  %v58_v28 = vsub.f32 %v35_v6, %v52_v22  ;;  %v59_v29 = vsub.f32 %v36_v7, %v52_v22  ;;  %v286_v33 = vsub.f32 %v37_v8, %v52_v22 }
  0x11   :  { %v61_v30 = vmul.f32 1.442695, %v53_v23  ;;  %v63_v31 = vmul.f32 1.442695, %v54_v24  ;;  %v65_v32 = vmul.f32 1.442695, %v55_v25 }
  0x12   :  { %v67_v34 = vmul.f32 1.442695, %v56_v26  ;;  %v69_v35 = vmul.f32 1.442695, %v57_v27  ;;  %v71_v36 = vmul.f32 1.442695, %v58_v28 }
  0x13   :  { %184 = vpow2.f32 %v61_v30  ;;  %v73_v37 = vmul.f32 1.442695, %v59_v29  ;;  %v75_v38 = vmul.f32 1.442695, %v286_v33 }
  0x14   :  { %186 = vpow2.f32 %v63_v31 }
  0x15   :  { %188 = vpow2.f32 %v65_v32 }
  0x16   :  { %190 = vpow2.f32 %v67_v34 }
  0x17   :  { %192 = vpow2.f32 %v69_v35 }
  0x18   :  { %194 = vpow2.f32 %v71_v36 }
  0x19   :  { %v185_v39 = vpop.eup %184  ;;  %196 = vpow2.f32 %v73_v37 }
  0x1a   :  { %v187_v40 = vpop.eup %186  ;;  %198 = vpow2.f32 %v75_v38  ;;  %v77_v41 = vsel %vm38_vm0, %v185_v39, 0.0  ;;  %v91_v52 = vmul.f32 %v185_v39, %v53_v23 }
  0x1b   :  { %v189_v42 = vpop.eup %188  ;;  %v78_v43 = vsel %vm38_vm0, %v187_v40, 0.0  ;;  %v92_v55 = vmul.f32 %v187_v40, %v54_v24 }
  0x1c   :  { %v191_v44 = vpop.eup %190  ;;  %v79_v45 = vadd.f32 %v78_v43, %v77_v41  ;;  %v80_v46 = vsel %vm38_vm0, %v189_v42, 0.0  ;;  %v93_v62 = vmul.f32 %v189_v42, %v55_v25  ;;  %v99_v63 = vsel %vm38_vm0, %v91_v52, 0.0 }
  0x1d   :  { %v193_v47 = vpop.eup %192  ;;  %v82_v48 = vsel %vm38_vm0, %v191_v44, 0.0  ;;  %v100_v2 = vsel %vm38_vm0, %v92_v55, 0.0  ;;  %v94_v4 = vmul.f32 %v191_v44, %v56_v26 }
  0x1e   :  { %v195_v49 = vpop.eup %194  ;;  %v81_v50 = vadd.f32 %v80_v46, %v79_v45  ;;  %v84_v51 = vsel %vm38_vm0, %v193_v47, 0.0  ;;  %v95_v0 = vmul.f32 %v193_v47, %v57_v27  ;;  %v101_v5 = vadd.f32 %v100_v2, %v99_v63 }
  0x1f   :  { %v197_v53 = vpop.eup %196  ;;  %v85_v54 = vsel %vm38_vm0, %v195_v49, 0.0  ;;  %v96_v1 = vmul.f32 %v195_v49, %v58_v28  ;;  %v102_v6 = vsel %vm38_vm0, %v93_v62, 0.0  ;;  %v104_v14 = vsel %vm38_vm0, %v94_v4, 0.0 }
  0x20   :  { %v199_v56 = vpop.eup %198  ;;  %v83_v57 = vadd.f32 %v82_v48, %v81_v50  ;;  %v86_v58 = vadd.f32 %v85_v54, %v84_v51  ;;  %v87_v59 = vsel %vm38_vm0, %v197_v53, 0.0  ;;  %v97_v7 = vmul.f32 %v197_v53, %v59_v29 }
  0x21   :  { %v89_v60 = vsel %vm38_vm0, %v199_v56, 0.0  ;;  %v106_v8 = vsel %vm38_vm0, %v95_v0, 0.0  ;;  %v107_v9 = vsel %vm38_vm0, %v96_v1, 0.0  ;;  %v103_v11 = vadd.f32 %v102_v6, %v101_v5 }
  0x22   :  { %v88_v61 = vadd.f32 %v87_v59, %v86_v58  ;;  %200 = vrcp.f32 %v83_v57  ;;  %v108_v12 = vadd.f32 %v107_v9, %v106_v8  ;;  %v109_v15 = vsel %vm38_vm0, %v97_v7, 0.0 }
  0x23   :  { %v126_v16 = vand.u32 2147483647, %v83_v57  ;;  %v128_v17 = vand.u32 2147483648, %v83_v57  ;;  %vm122_vm1 = vweird.f32 %v83_v57  ;;  %v98_v20 = vmul.f32 %v199_v56, %v286_v33  ;;  %v159_v56 = vld [vmem:[#allocation5] sm:$0x1] }
  0x24   :  { %v90_v3 = vadd.f32 %v89_v60, %v88_v61  ;;  %v105_v21 = vadd.f32 %v104_v14, %v103_v11  ;;  %v110_v22 = vadd.f32 %v109_v15, %v108_v12 }
  0x25   :  { %vm127_vm4 = vcmp.eq.f32.partialorder %v126_v16, 8.507059e+37  ;;  %v129_v26 = vor.u32 1.1754944e-38, %v128_v17  ;;  %v111_v31 = vsel %vm38_vm0, %v98_v20, 0.0 }
  0x26   :  { %202 = vrcp.f32 %v90_v3  ;;  %vm137_vm5 = vweird.f32 %v90_v3  ;;  %v143_v27 = vand.u32 2147483648, %v90_v3  ;;  %v141_v30 = vand.u32 2147483647, %v90_v3 }
  0x27   :  { %204 = vlog2.f32 %v83_v57  ;;  %v112_v38 = vadd.f32 %v111_v31, %v110_v22 }
  0x28   :  { %v201_v10 = vpop.eup %200  ;;  %206 = vlog2.f32 %v90_v3  ;;  %v144_v37 = vor.u32 1.1754944e-38, %v143_v27  ;;  %vm142_vm8 = vcmp.eq.f32.partialorder %v141_v30, 8.507059e+37 }
  0x29   :  { %v118_v13 = vmul.f32 %v201_v10, %v83_v57  ;;  %vm123_vm2 = vweird.f32 %v201_v10 }
  0x2a   :  { %vm124_vm3 = vmor %vm122_vm1, %vm123_vm2 }
  0x2b   :  { %v119_v18 = vsub.f32 1.0, %v118_v13 }
  0x2c   :  { %v203_v19 = vpop.eup %202 }
  0x2d   :  { %v120_v23 = vmul.f32 %v201_v10, %v119_v18  ;;  %v133_v24 = vmul.f32 %v203_v19, %v90_v3  ;;  %v205_v25 = vpop.eup %204  ;;  %vm138_vm6 = vweird.f32 %v203_v19 }
  0x2e   :  { %v114_v32 = vmul.f32 0.6931472, %v205_v25  ;;  %v207_v35 = vpop.eup %206  ;;  %vm139_vm7 = vmor %vm137_vm5, %vm138_vm6 }
  0x2f   :  { %v121_v28 = vadd.f32 %v201_v10, %v120_v23  ;;  %v134_v29 = vsub.f32 1.0, %v133_v24  ;;  %v116_v41 = vmul.f32 0.6931472, %v207_v35 }
  0x31   :  { %v125_v34 = vsel %vm124_vm3, %v201_v10, %v121_v28  ;;  %v135_v33 = vmul.f32 %v203_v19, %v134_v29 }
  0x32   :  { %v130_v36 = vsel %vm127_vm4, %v129_v26, %v125_v34 }
  0x33   :  { %v131_v39 = vmul.f32 %v130_v36, %v105_v21  ;;  %v136_v40 = vadd.f32 %v203_v19, %v135_v33 }
  0x35   :  { %v140_v42 = vsel %vm139_vm7, %v203_v19, %v136_v40  ;;  %v147_v43 = vsub.f32 %v114_v32, %v131_v39 }
  0x36   :  { %v145_v44 = vsel %vm142_vm8, %v144_v37, %v140_v42 }
  0x37   :  { %v146_v45 = vmul.f32 %v145_v44, %v112_v38  ;;  %v149_v47 = vsel %vm38_vm0, %v147_v43, 0.0 }
  0x39   :  { %v148_v46 = vsub.f32 %v116_v41, %v146_v45 }
  0x3b   :  { %v150_v48 = vsel %vm38_vm0, %v148_v46, 0.0 }
  0x3c   :  { %v151_v49 = vadd.f32 %v150_v48, %v149_v47 }
  0x3e   :  { %v152_v50 = vsel %vm38_vm0, %v151_v49, 0.0 }
  0x3f   :  { %v153_v51 = vrot.slane %v152_v50, 4 }
  0x41   :  { %v154_v52 = vadd.f32 %v153_v51, %v152_v50 }
  0x43   :  { %v155_v53 = vrot.slane %v154_v52, 2 }
  0x45   :  { %v156_v54 = vadd.f32 %v155_v53, %v154_v52 }
  0x47   :  { %v157_v55 = vrot.slane %v156_v54, 1 }
  0x49   :  { %v158_v57 = vadd.f32 %v157_v55, %v156_v54 }
  0x4b   :  { %v160_v58 = vadd.f32 %v159_v56, %v158_v57 }
  0x4d   :  { %161 = vst [vmem:[#allocation5] sm:$0x1] %v160_v58 }
  0x4e   :  { %172 = dma.vmem_to_hbm [thread:$0]  %s168_s13, 16, %s170_s16, [#allocation4]  }
  0x4f   :  { %258 = dma.done.wait [#allocation4], 16  }
  0x50   :  { %259 = vsyncadd [#allocation4], 4294967280 }
  0x51   :  { %177 = vsyncpa [#allocation3], 1 }
  0x52   :  { %178 = vsyncpa [#allocation4], 1 }

</bundles_post_ra>
